<compile_context>
chip_gen: v7x
topology: tpu7x:2x2x1
jax: 0.10.0
libtpu: 0.0.40
codegen_flags: <defaults>
</compile_context>

<pallas_src>
import numpy as np
import jax
import jax.numpy as jnp
from jax.experimental import pallas as pl
from jax.experimental.pallas import tpu as pltpu

CLASS_NUM = 2
C_IN = 512
H = W = 8
HW = H * W  # 64


def _pool_matrix(in_hw, out_hw):
    """Average-pool matrix mapping flattened (in_hw*in_hw) -> (out_hw*out_hw)."""
    f = in_hw // out_hw
    m = np.zeros((in_hw * in_hw, out_hw * out_hw), np.float32)
    for i in range(in_hw):
        for j in range(in_hw):
            m[i * in_hw + j, (i // f) * out_hw + (j // f)] = 1.0 / (f * f)
    return m


_P84 = _pool_matrix(8, 4)                       # (64, 16)  8x8 -> 4x4
_P82 = _P84 @ _pool_matrix(4, 2)                # (64, 4)   8x8 -> 4x4 -> 2x2
_P81 = _P82 @ _pool_matrix(2, 1)                # (64, 1)   == mean over the 8x8 map


def _pyramid_kernel(x_ref, w_ref, m0_ref, m1_ref, m2_ref, brow_ref, b8_ref, o_ref):
    f32 = jnp.float32
    # Fused 1x1 convs: one (8,512)@(512, TB*64) MXU matmul (bf16 in, f32 acc).
    z = jnp.dot(w_ref[...], x_ref[...], preferred_element_type=f32)      # (8, L)
    z8 = z[0:1, :]                                                       # w8 . x (pre-bias)
    y8 = z8 + b8_ref[0]                                                  # (1, L)

    # Pooling + output packing + fc1 folded into three small block-diagonal
    # matmuls on the channel-contracted rows (z8, w4.x, w2.x).
    t = (jnp.dot(z8, m0_ref[...], preferred_element_type=f32)
         + jnp.dot(z[1:2, :], m1_ref[...], preferred_element_type=f32)
         + jnp.dot(z[2:3, :], m2_ref[...], preferred_element_type=f32)
         + brow_ref[...])                                                # (1, L)

    # Single lane-dense output slab: row 0 = sigmoid(y8), row 1 = packed rest.
    o_ref[0] = jnp.concatenate([jax.nn.sigmoid(y8), jax.nn.sigmoid(t)], axis=0)


def surf_pyramid_head(x_rgb, params, tile_batch=8):
    """x_rgb: backbone feature map (B, 512, 8, 8), float32 (NCHW)."""
    B, C, h, w = x_rgb.shape
    assert (C, h, w) == (C_IN, H, W)
    CN = CLASS_NUM

    # Batch tile (even so lane width TB*64 is a multiple of 128).
    tb = min(tile_batch, B + (B % 2))
    tb = tb + (tb % 2)
    g = -(-B // tb)
    bp = g * tb
    L = tb * HW

    # ---- input layout: (512, Bp*64) -- channels on sublanes, batch*spatial on lanes.
    x = x_rgb.astype(jnp.float32).reshape(B, C_IN, HW)
    if bp > B:
        x = jnp.concatenate([x, jnp.zeros((bp - B, C_IN, HW), x.dtype)], axis=0)
    x = jnp.transpose(x, (1, 0, 2)).reshape(C_IN, bp * HW).astype(jnp.bfloat16)

    # ---- fused conv weight (8, 512): rows 0..2 = w8, w4, w2, rest zero.
    w8 = params["w8"].reshape(1, C_IN).astype(jnp.float32)
    w4 = params["w4"].reshape(1, C_IN).astype(jnp.float32)
    w2 = params["w2"].reshape(1, C_IN).astype(jnp.float32)
    wfused = jnp.concatenate([w8, w4, w2, jnp.zeros((5, C_IN), jnp.float32)], axis=0)
    wfused = wfused.astype(jnp.bfloat16)

    b8 = jnp.asarray(params["b8"], jnp.float32).reshape(1)
    b4 = jnp.asarray(params["b4"], jnp.float32)
    b2 = jnp.asarray(params["b2"], jnp.float32)

    # ---- fc1 folded onto the channel-contracted rows (fc acts on pre-sigmoid features).
    fcw = params["fc1_w"].astype(jnp.float32)               # (CN, 85)
    fcb = params["fc1_b"].astype(jnp.float32)               # (CN,)
    g8 = fcw[:, 0:64].T                                     # (64, CN)
    g4 = fcw[:, 64:80].T                                    # (16, CN)
    g2 = fcw[:, 80:84].T                                    # (4, CN)
    g1 = fcw[:, 84]                                         # (CN,)
    p84 = jnp.asarray(_P84)
    p82 = jnp.asarray(_P82)
    p81 = jnp.asarray(_P81)
    h0 = g8 + p81 @ g1[None, :]          # z8 contributes via y8 and via y1 = mean(z8)+b8
    h1 = p84 @ g4                        # (w4.x) row
    h2 = p82 @ g2                        # (w2.x) row

    # ---- block-diagonal pool/pack/fc matrices (L, L).
    # output lane layout of the packed row:
    #   [0,16tb)      : y4 (4x4)        [16tb,20tb) : y2 (2x2)
    #   [20tb,21tb)   : y1 (1x1)        [21tb,21tb+CN*tb) : fc1 logits     rest: pad
    eye = jnp.eye(tb, dtype=jnp.float32)
    a4 = jnp.asarray(np.kron(np.eye(tb, dtype=np.float32), _P84))   # (L, 16tb)
    a2 = jnp.asarray(np.kron(np.eye(tb, dtype=np.float32), _P82))   # (L, 4tb)
    a1 = jnp.asarray(np.kron(np.eye(tb, dtype=np.float32), _P81))   # (L, tb)
    bh0 = jnp.kron(eye, h0)                                         # (L, CN*tb)
    bh1 = jnp.kron(eye, h1)
    bh2 = jnp.kron(eye, h2)

    pad = L - (21 + CN) * tb
    zc = lambda n: jnp.zeros((L, n), jnp.float32)
    m0 = jnp.concatenate([zc(20 * tb), a1, bh0, zc(pad)], axis=1)
    m1 = jnp.concatenate([a4, zc(5 * tb), bh1, zc(pad)], axis=1)
    m2 = jnp.concatenate([zc(16 * tb), a2, zc(tb), bh2, zc(pad)], axis=1)

    # bias row for the packed output (conv biases added after pooling; fc bias
    # absorbs the contribution of the conv biases through fc1).
    eff = fcb + b8[0] * g8.sum(0) + b4 * g4.sum(0) + b2 * g2.sum(0) + b8[0] * g1
    one = jnp.ones((), jnp.float32)
    brow = jnp.concatenate([
        jnp.ones((16 * tb,), jnp.float32) * b4,
        jnp.ones((4 * tb,), jnp.float32) * b2,
        jnp.ones((tb,), jnp.float32) * b8[0],
        jnp.tile(eff, tb),
        jnp.zeros((pad,), jnp.float32) * one,
    ]).reshape(1, L)

    in_specs = [
        pl.BlockSpec((C_IN, L), lambda i: (0, i)),            # x tile (TB samples)
        pl.BlockSpec((8, C_IN), lambda i: (0, 0)),            # fused conv weight
        pl.BlockSpec((L, L), lambda i: (0, 0)),               # m0
        pl.BlockSpec((L, L), lambda i: (0, 0)),               # m1
        pl.BlockSpec((L, L), lambda i: (0, 0)),               # m2
        pl.BlockSpec((1, L), lambda i: (0, 0)),               # packed bias row
        pl.BlockSpec(memory_space=pltpu.MemorySpace.SMEM),    # b8 scalar
    ]
    out_specs = pl.BlockSpec((1, 2, L), lambda i: (i, 0, 0))
    out_shape = jax.ShapeDtypeStruct((g, 2, L), jnp.float32)

    slab = pl.pallas_call(
        _pyramid_kernel,
        out_shape=out_shape,
        grid=(g,),
        in_specs=in_specs,
        out_specs=out_specs,
        compiler_params=pltpu.CompilerParams(dimension_semantics=("parallel",)),
    )(x, wfused, m0, m1, m2, brow, b8)

    # ---- unpack the lane-dense slab (cheap XLA slicing/reshapes).
    row0 = slab[:, 0, :].reshape(bp, HW)[:B]                       # sigmoid(y8)
    row1 = slab[:, 1, :]
    o8 = row0.reshape(B, 1, 8, 8)
    o4 = row1[:, :16 * tb].reshape(bp, 16)[:B].reshape(B, 1, 4, 4)
    o2 = row1[:, 16 * tb:20 * tb].reshape(bp, 4)[:B].reshape(B, 1, 2, 2)
    o1 = row1[:, 20 * tb:21 * tb].reshape(bp, 1)[:B].reshape(B, 1, 1, 1)
    ob = row1[:, 21 * tb:(21 + CN) * tb].reshape(bp, CN)[:B]
    return o8, o4, o2, o1, ob


def reference(x_rgb, params):
    """Pure-JAX reference matching the PyTorch forward (origin_deeppix branch)."""
    B = x_rgb.shape[0]
    w8 = params["w8"].reshape(C_IN)
    w4 = params["w4"].reshape(C_IN)
    w2 = params["w2"].reshape(C_IN)
    b8, b4, b2 = params["b8"], params["b4"], params["b2"]

    def conv1x1(x, w, b):                       # (B, 512, h, w) -> (B, 1, h, w)
        return jnp.einsum("bchw,c->bhw", x, w)[:, None] + b

    def avgpool(x, out):
        Bb, Cc, Hh, Ww = x.shape
        f = Hh // out
        return x.reshape(Bb, Cc, out, f, out, f).mean(axis=(3, 5))

    x8 = x_rgb                                  # pool_8x8 on an 8x8 map is identity
    y8 = conv1x1(x8, w8, b8)
    x4 = avgpool(x8, 4); y4 = conv1x1(x4, w4, b4)
    x2 = avgpool(x4, 2); y2 = conv1x1(x2, w2, b2)
    x1 = avgpool(x2, 1); y1 = conv1x1(x1, w8, b8)     # reuses conv_1x1_8, as in the module

    flat = jnp.concatenate([y8.reshape(B, -1), y4.reshape(B, -1),
                            y2.reshape(B, -1), y1.reshape(B, -1)], axis=1)
    out_binary = jax.nn.sigmoid(flat @ params["fc1_w"].T + params["fc1_b"])
    return (jax.nn.sigmoid(y8), jax.nn.sigmoid(y4),
            jax.nn.sigmoid(y2), jax.nn.sigmoid(y1), out_binary)


if __name__ == "__main__":
    key = jax.random.PRNGKey(0)
    k_x, k8, k4, k2, kf, kb = jax.random.split(key, 6)

    B = 2
    x_rgb = jax.random.normal(k_x, (B, C_IN, H, W), dtype=jnp.float32)

    params = {
        "w8": 0.02 * jax.random.normal(k8, (1, C_IN, 1, 1), dtype=jnp.float32),
        "b8": jnp.float32(0.01),
        "w4": 0.02 * jax.random.normal(k4, (1, C_IN, 1, 1), dtype=jnp.float32),
        "b4": jnp.float32(-0.02),
        "w2": 0.02 * jax.random.normal(k2, (1, C_IN, 1, 1), dtype=jnp.float32),
        "b2": jnp.float32(0.03),
        "fc1_w": 0.05 * jax.random.normal(kf, (CLASS_NUM, 64 + 16 + 4 + 1), dtype=jnp.float32),
        "fc1_b": 0.01 * jax.random.normal(kb, (CLASS_NUM,), dtype=jnp.float32),
    }

    outs = surf_pyramid_head(x_rgb, params)
    outs = jax.block_until_ready(outs)

    refs = reference(x_rgb, params)
    # Tolerance loosened slightly vs a pure-f32 kernel because the 512-deep channel
    # contraction uses bf16 operands (f32 accumulation), per the perf review.
    for o, r in zip(outs, refs):
        assert o.shape == r.shape, (o.shape, r.shape)
        np.testing.assert_allclose(np.asarray(o), np.asarray(r), rtol=5e-3, atol=5e-3)

    print("KERNEL_OK")
</pallas_src>

<mosaic_0001>
module attributes {stable_mosaic.version = 11 : i64} {
  func.func @_pyramid_kernel(%arg0: i32, %arg1: memref<512x128xbf16, #tpu.memory_space<vmem>>, %arg2: memref<8x512xbf16, #tpu.memory_space<vmem>>, %arg3: memref<128x128xf32, #tpu.memory_space<vmem>>, %arg4: memref<128x128xf32, #tpu.memory_space<vmem>>, %arg5: memref<128x128xf32, #tpu.memory_space<vmem>>, %arg6: memref<1x128xf32, #tpu.memory_space<vmem>>, %arg7: memref<1xf32, #tpu.memory_space<smem>>, %arg8: memref<1x2x128xf32, #tpu.memory_space<vmem>>) attributes {dimension_semantics = [#tpu.dimension_semantics<parallel>], iteration_bounds = array<i64: 1>, scalar_prefetch = 0 : i64, scratch_operands = 0 : i64, tpu.core_type = #tpu.core_type<tc>, window_params = [{transform_indices = @transform_0, window_bounds = array<i64: 512, 128>}, {pipeline_mode = #tpu.pipeline_mode<synchronous>, transform_indices = @transform_1, window_bounds = array<i64: 8, 512>}, {pipeline_mode = #tpu.pipeline_mode<synchronous>, transform_indices = @transform_2, window_bounds = array<i64: 128, 128>}, {pipeline_mode = #tpu.pipeline_mode<synchronous>, transform_indices = @transform_3, window_bounds = array<i64: 128, 128>}, {pipeline_mode = #tpu.pipeline_mode<synchronous>, transform_indices = @transform_4, window_bounds = array<i64: 128, 128>}, {pipeline_mode = #tpu.pipeline_mode<synchronous>, transform_indices = @transform_5, window_bounds = array<i64: 1, 128>}, {transform_indices = @transform_6, window_bounds = array<i64: 1>}, {transform_indices = @transform_7, window_bounds = array<i64: 1, 2, 128>}]} {
    %c0 = arith.constant 0 : index
    %c0_0 = arith.constant 0 : index
    %0 = vector.load %arg2[%c0, %c0_0] : memref<8x512xbf16, #tpu.memory_space<vmem>>, vector<8x512xbf16>
    %c0_1 = arith.constant 0 : index
    %c0_2 = arith.constant 0 : index
    %1 = vector.load %arg1[%c0_1, %c0_2] : memref<512x128xbf16, #tpu.memory_space<vmem>>, vector<512x128xbf16>
    %cst = arith.constant dense<0.000000e+00> : vector<8x128xf32>
    %2 = tpu.matmul %0, %1, %cst {dimension_numbers = #tpu.dot_dimension_numbers<[1], [0], [0], [1], [0, 0, 1, 1], [], []>} : vector<8x512xbf16>, vector<512x128xbf16>, vector<8x128xf32> -> vector<8x128xf32>
    %3 = vector.extract_strided_slice %2 {offsets = [0, 0], sizes = [1, 128], strides = [1, 1]} : vector<8x128xf32> to vector<1x128xf32>
    %c0_3 = arith.constant 0 : index
    %4 = memref.load %arg7[%c0_3] : memref<1xf32, #tpu.memory_space<smem>>
    %5 = vector.broadcast %4 : f32 to vector<1x128xf32>
    %6 = arith.addf %3, %5 : vector<1x128xf32>
    %c0_4 = arith.constant 0 : index
    %c0_5 = arith.constant 0 : index
    %7 = vector.load %arg3[%c0_4, %c0_5] : memref<128x128xf32, #tpu.memory_space<vmem>>, vector<128x128xf32>
    %cst_6 = arith.constant dense<0.000000e+00> : vector<1x128xf32>
    %8 = tpu.matmul %3, %7, %cst_6 {dimension_numbers = #tpu.dot_dimension_numbers<[1], [0], [0], [1], [0, 0, 1, 1], [], []>} : vector<1x128xf32>, vector<128x128xf32>, vector<1x128xf32> -> vector<1x128xf32>
    %9 = vector.extract_strided_slice %2 {offsets = [1, 0], sizes = [1, 128], strides = [1, 1]} : vector<8x128xf32> to vector<1x128xf32>
    %c0_7 = arith.constant 0 : index
    %c0_8 = arith.constant 0 : index
    %10 = vector.load %arg4[%c0_7, %c0_8] : memref<128x128xf32, #tpu.memory_space<vmem>>, vector<128x128xf32>
    %cst_9 = arith.constant dense<0.000000e+00> : vector<1x128xf32>
    %11 = tpu.matmul %9, %10, %cst_9 {dimension_numbers = #tpu.dot_dimension_numbers<[1], [0], [0], [1], [0, 0, 1, 1], [], []>} : vector<1x128xf32>, vector<128x128xf32>, vector<1x128xf32> -> vector<1x128xf32>
    %12 = arith.addf %8, %11 : vector<1x128xf32>
    %13 = vector.extract_strided_slice %2 {offsets = [2, 0], sizes = [1, 128], strides = [1, 1]} : vector<8x128xf32> to vector<1x128xf32>
    %c0_10 = arith.constant 0 : index
    %c0_11 = arith.constant 0 : index
    %14 = vector.load %arg5[%c0_10, %c0_11] : memref<128x128xf32, #tpu.memory_space<vmem>>, vector<128x128xf32>
    %cst_12 = arith.constant dense<0.000000e+00> : vector<1x128xf32>
    %15 = tpu.matmul %13, %14, %cst_12 {dimension_numbers = #tpu.dot_dimension_numbers<[1], [0], [0], [1], [0, 0, 1, 1], [], []>} : vector<1x128xf32>, vector<128x128xf32>, vector<1x128xf32> -> vector<1x128xf32>
    %16 = arith.addf %12, %15 : vector<1x128xf32>
    %c0_13 = arith.constant 0 : index
    %c0_14 = arith.constant 0 : index
    %17 = vector.load %arg6[%c0_13, %c0_14] : memref<1x128xf32, #tpu.memory_space<vmem>>, vector<1x128xf32>
    %18 = arith.addf %16, %17 : vector<1x128xf32>
    %19 = arith.negf %6 : vector<1x128xf32>
    %20 = math.exp %19 : vector<1x128xf32>
    %cst_15 = arith.constant 1.000000e+00 : f32
    %21 = vector.broadcast %cst_15 : f32 to vector<1x128xf32>
    %22 = arith.addf %21, %20 : vector<1x128xf32>
    %23 = arith.divf %21, %22 : vector<1x128xf32>
    %24 = arith.negf %18 : vector<1x128xf32>
    %25 = math.exp %24 : vector<1x128xf32>
    %cst_16 = arith.constant 1.000000e+00 : f32
    %26 = vector.broadcast %cst_16 : f32 to vector<1x128xf32>
    %27 = arith.addf %26, %25 : vector<1x128xf32>
    %28 = arith.divf %26, %27 : vector<1x128xf32>
    %29 = tpu.concatenate %23, %28 in 0 : vector<1x128xf32>, vector<1x128xf32> -> vector<2x128xf32>
    %c0_17 = arith.constant 0 : index
    %c0_18 = arith.constant 0 : index
    %c0_19 = arith.constant 0 : index
    %30 = vector.load %arg8[%c0_17, %c0_18, %c0_19] : memref<1x2x128xf32, #tpu.memory_space<vmem>>, vector<1x2x128xf32>
    %31 = vector.shape_cast %30 : vector<1x2x128xf32> to vector<2x128xf32>
    %32 = vector.shape_cast %29 : vector<2x128xf32> to vector<1x2x128xf32>
    tpu.vector_store %arg8[%c0_17, %c0_18, %c0_19], %32 {strides = array<i32>} : memref<1x2x128xf32, #tpu.memory_space<vmem>>, vector<1x2x128xf32>,
    return
  }
  func.func @transform_0(%arg0: i32) -> (i32, i32) {
    %c0_i32 = arith.constant 0 : i32
    %c0_i32_0 = arith.constant 0 : i32
    return %c0_i32, %arg0 : i32, i32
  }
  func.func @transform_1(%arg0: i32) -> (i32, i32) {
    %c0_i32 = arith.constant 0 : i32
    %c0_i32_0 = arith.constant 0 : i32
    %c0_i32_1 = arith.constant 0 : i32
    return %c0_i32, %c0_i32_0 : i32, i32
  }
  func.func @transform_2(%arg0: i32) -> (i32, i32) {
    %c0_i32 = arith.constant 0 : i32
    %c0_i32_0 = arith.constant 0 : i32
    %c0_i32_1 = arith.constant 0 : i32
    return %c0_i32, %c0_i32_0 : i32, i32
  }
  func.func @transform_3(%arg0: i32) -> (i32, i32) {
    %c0_i32 = arith.constant 0 : i32
    %c0_i32_0 = arith.constant 0 : i32
    %c0_i32_1 = arith.constant 0 : i32
    return %c0_i32, %c0_i32_0 : i32, i32
  }
  func.func @transform_4(%arg0: i32) -> (i32, i32) {
    %c0_i32 = arith.constant 0 : i32
    %c0_i32_0 = arith.constant 0 : i32
    %c0_i32_1 = arith.constant 0 : i32
    return %c0_i32, %c0_i32_0 : i32, i32
  }
  func.func @transform_5(%arg0: i32) -> (i32, i32) {
    %c0_i32 = arith.constant 0 : i32
    %c0_i32_0 = arith.constant 0 : i32
    %c0_i32_1 = arith.constant 0 : i32
    return %c0_i32, %c0_i32_0 : i32, i32
  }
  func.func @transform_6(%arg0: i32) -> i32 {
    %c0_i32 = arith.constant 0 : i32
    %c0_i32_0 = arith.constant 0 : i32
    return %c0_i32 : i32
  }
  func.func @transform_7(%arg0: i32) -> (i32, i32, i32) {
    %c0_i32 = arith.constant 0 : i32
    %c0_i32_0 = arith.constant 0 : i32
    %c0_i32_1 = arith.constant 0 : i32
    return %arg0, %c0_i32, %c0_i32_0 : i32, i32, i32
  }
}

</mosaic_0001>

<bundles_post_ra>
// kernel: tpu_custom_call.1
= control target key start
LH: loop header
LB: loop body
LE: loop exit
PB: predicated region body
PF: predicated region fallthrough
CT: control target
= control target key end

     0   :  { %13 = vsyncpa [#allocation4], 0  ;;  %s1425_s0 = inlined_call_operand.hbm [shape: bf16[512,128], index: 0, kind: input, shape index: {}]   ;;  %s1426_s1 = inlined_call_operand.hbm [shape: bf16[8,512], index: 1, kind: input, shape index: {}]   ;;  %s1427_s2 = inlined_call_operand.hbm [shape: f32[128,128], index: 2, kind: input, shape index: {}]   ;;  %s1428_s3 = inlined_call_operand.hbm [shape: f32[128,128], index: 3, kind: input, shape index: {}]   ;;  %s1429_s4 = inlined_call_operand.hbm [shape: f32[128,128], index: 4, kind: input, shape index: {}]   ;;  %s1430_s5 = inlined_call_operand.vmem [shape: f32[1,128], index: 5, kind: input, shape index: {}]   ;;  %s1431_s6 = inlined_call_operand.<no memory space> [shape: f32[1], index: 6, kind: input, shape index: {}]   ;;  %s1432_s7 = inlined_call_operand.hbm [shape: f32[1,2,128], index: 7, kind: output, shape index: {}]  }
   0x1   :  { %14 = vsyncpa [#allocation7], 0 }
   0x2   :  { %15 = vsyncpa [#allocation10], 0 }
   0x3   :  { %16 = vsyncpa [#allocation5], 0  ;;  %s1258_s24 = smov [#allocation6]   ;;  %s1118_s28 = scalar_lea.hbm %s1426_s1, 256 }
   0x4   :  { %s35_s25 = sshll.u32 %s1258_s24, 4  ;;  %p1119_p0 = scmp.ne.s32.totalorder %s1426_s1, %s1118_s28  ;;  %s36_s25 = int_to_ptr.vmem [resolvable:$true] %s35_s25 }
   0x5   :  { %p1122_p1 = scmp.lt.u32.totalorder %s1118_s28, %s1426_s1 }
   0x7   :  { %p1124_p2 = pnand %p1122_p1, %p1119_p0 }
   0x9   :  { %1127 = shalt.err (!%p1124_p2)
}
   0xa   :  { %s1128_s10 = scalar_lea.vmem %s36_s25, 256  ;;  %p1133_p4 = scmp.lt.s32.totalorder %s36_s25, %s36_s25 }
   0xb   :  { %p1129_p3 = scmp.ne.s32.totalorder %s36_s25, %s1128_s10  ;;  %p1134_p5 = scmp.lt.s32.totalorder %s1128_s10, %s1128_s10 }
   0xd   :  { %p1135_p6 = por %p1134_p5, %p1133_p4 }
   0xf   :  { %p1136_p7 = pnand %p1135_p6, %p1129_p3 }
  0x11   :  { %1139 = shalt.err (!%p1136_p7)
}
  0x12   :  { %38 = dma.hbm_to_vmem [thread:$0]  %s1426_s1, 256, %s36_s25, [#allocation7]  }
  0x13   :  { %s1259_s13 = smov [#allocation9]   ;;  %s1260_s15 = smov [#allocation3]  }
  0x14   :  { %s56_s14 = sshll.u32 %s1259_s13, 4  ;;  %s22_s16 = sshll.u32 %s1260_s15, 4  ;;  %s57_s14 = int_to_ptr.vmem [resolvable:$true] %s56_s14  ;;  %s23_s16 = int_to_ptr.vmem [resolvable:$true] %s22_s16 }
  0x15   :  { %s1140_s19 = scalar_lea.hbm %s1428_s3, 2048 }
  0x16   :  { %p1141_p8 = scmp.ne.s32.totalorder %s1428_s3, %s1140_s19  ;;  %p1144_p9 = scmp.lt.u32.totalorder %s1140_s19, %s1428_s3 }
  0x18   :  { %p1146_p10 = pnand %p1144_p9, %p1141_p8 }
  0x1a   :  { %1149 = shalt.err (!%p1146_p10)
}
  0x1b   :  { %s1150_s1 = scalar_lea.vmem %s57_s14, 2048  ;;  %p1155_p12 = scmp.lt.s32.totalorder %s57_s14, %s57_s14 }
  0x1c   :  { %p1151_p11 = scmp.ne.s32.totalorder %s57_s14, %s1150_s1  ;;  %p1156_p13 = scmp.lt.s32.totalorder %s1150_s1, %s1150_s1 }
  0x1e   :  { %p1157_p0 = por %p1156_p13, %p1155_p12 }
  0x20   :  { %p1158_p1 = pnand %p1157_p0, %p1151_p11 }
  0x22   :  { %1161 = shalt.err (!%p1158_p1)
}
  0x23   :  { %s1261_s24 = smov 128   ;;  %s1262_s25 = smov 8  }
  0x24   :  { %62 = dma.hbm_to_vmem [thread:$0]  %s1428_s3, 2048, %s57_s14, [#allocation10], %s1261_s24, %s1261_s24, %s1262_s25  }
  0x25   :  { %s1162_s30 = scalar_lea.hbm %s1425_s0, 4096 }
  0x26   :  { %p1163_p2 = scmp.ne.s32.totalorder %s1425_s0, %s1162_s30  ;;  %p1166_p3 = scmp.lt.u32.totalorder %s1162_s30, %s1425_s0 }
  0x28   :  { %p1168_p4 = pnand %p1166_p3, %p1163_p2 }
  0x2a   :  { %1171 = shalt.err (!%p1168_p4)
}
  0x2b   :  { %s1172_s12 = scalar_lea.vmem %s23_s16, 4096  ;;  %p1177_p6 = scmp.lt.s32.totalorder %s23_s16, %s23_s16 }
  0x2c   :  { %p1173_p5 = scmp.ne.s32.totalorder %s23_s16, %s1172_s12  ;;  %p1178_p7 = scmp.lt.s32.totalorder %s1172_s12, %s1172_s12 }
  0x2e   :  { %p1179_p8 = por %p1178_p7, %p1177_p6 }
  0x30   :  { %p1180_p9 = pnand %p1179_p8, %p1173_p5 }
  0x32   :  { %1183 = shalt.err (!%p1180_p9)
}
  0x33   :  { %s1263_s3 = smov 64   ;;  %s1264_s13 = smov 4  }
  0x34   :  { %28 = dma.hbm_to_vmem [thread:$0]  %s1425_s0, 4096, %s23_s16, [#allocation4], %s1263_s3, %s1263_s3, %s1264_s13  }
  0x35   :  { %s1265_s17 = smov [#allocation8]   ;;  %s1266_s19 = smov [#allocation11]  }
  0x36   :  { %s44_s18 = sshll.u32 %s1265_s17, 4  ;;  %s68_s20 = sshll.u32 %s1266_s19, 4  ;;  %s45_s18 = int_to_ptr.vmem [resolvable:$true] %s44_s18  ;;  %s69_s20 = int_to_ptr.vmem [resolvable:$true] %s68_s20 }
  0x37   :  { %s1184_s23 = scalar_lea.hbm %s1427_s2, 2048 }
  0x38   :  { %p1185_p10 = scmp.ne.s32.totalorder %s1427_s2, %s1184_s23  ;;  %p1188_p11 = scmp.lt.u32.totalorder %s1184_s23, %s1427_s2 }
  0x3a   :  { %p1190_p12 = pnand %p1188_p11, %p1185_p10 }
  0x3c   :  { %1193 = shalt.err (!%p1190_p12)
}
  0x3d   :  { %s1194_s0 = scalar_lea.vmem %s45_s18, 2048  ;;  %p1199_p0 = scmp.lt.s32.totalorder %s45_s18, %s45_s18 }
  0x3e   :  { %p1195_p13 = scmp.ne.s32.totalorder %s45_s18, %s1194_s0  ;;  %p1200_p1 = scmp.lt.s32.totalorder %s1194_s0, %s1194_s0 }
  0x40   :  { %p1201_p2 = por %p1200_p1, %p1199_p0 }
  0x42   :  { %p1202_p3 = pnand %p1201_p2, %p1195_p13 }
  0x44   :  { %1205 = shalt.err (!%p1202_p3)
}
  0x45   :  { %50 = dma.hbm_to_vmem [thread:$0]  %s1427_s2, 2048, %s45_s18, [#allocation7], %s1261_s24, %s1261_s24, %s1262_s25  }
  0x46   :  { %s1206_s9 = scalar_lea.hbm %s1429_s4, 2048 }
  0x47   :  { %p1207_p4 = scmp.ne.s32.totalorder %s1429_s4, %s1206_s9  ;;  %p1210_p5 = scmp.lt.u32.totalorder %s1206_s9, %s1429_s4 }
  0x49   :  { %p1212_p6 = pnand %p1210_p5, %p1207_p4 }
  0x4b   :  { %1215 = shalt.err (!%p1212_p6)
}
  0x4c   :  { %s1216_s13 = scalar_lea.vmem %s69_s20, 2048  ;;  %p1221_p8 = scmp.lt.s32.totalorder %s69_s20, %s69_s20 }
  0x4d   :  { %p1217_p7 = scmp.ne.s32.totalorder %s69_s20, %s1216_s13  ;;  %p1222_p9 = scmp.lt.s32.totalorder %s1216_s13, %s1216_s13 }
  0x4f   :  { %p1223_p10 = por %p1222_p9, %p1221_p8 }
  0x51   :  { %p1224_p11 = pnand %p1223_p10, %p1217_p7 }
  0x53   :  { %1227 = shalt.err (!%p1224_p11)
}
  0x54   :  { %74 = dma.hbm_to_vmem [thread:$0]  %s1429_s4, 2048, %s69_s20, [#allocation10], %s1261_s24, %s1261_s24, %s1262_s25  }
  0x55   :  { %1250 = dma.done.wait [#allocation4], 4096  }
  0x56   :  { %1251 = vsyncadd [#allocation4], 4294963200 }
  0x57   :  { %1252 = dma.done.wait [#allocation7], 2304  }
  0x58   :  { %1253 = vsyncadd [#allocation7], 4294964992 }
  0x59   :  { %1254 = dma.done.wait [#allocation10], 4096  }
  0x5a   :  { %1255 = vsyncadd [#allocation10], 4294963200  ;;  %v1074_v0 = vld [vmem:[#allocation3 + $0x40] sm:$0xff]   ;;  %v1078_v4 = vld [vmem:[#allocation3 + $0x48] sm:$0xff]   ;;  %v1267_v42 = vmov 0.0|0.0   ;;  %vm1268_vm0 = vmmov 0  }
  0x5b   :  { %v1075_v1 = vld [vmem:[#allocation3 + $0xc0] sm:$0xff]   ;;  %789 = vmatprep.subr.bf16.mxu0 %v1074_v0  ;;  %v1079_v5 = vld [vmem:[#allocation3 + $0xc8] sm:$0xff]   ;;  %v1082_v8 = vld [vmem:[#allocation3 + $0x50] sm:$0xff]   ;;  %vm731_vm1 = vcmask 1040384  }
  0x5c   :  { %v1076_v2 = vld [vmem:[#allocation3] sm:$0xff]   ;;  %811 = vmatprep.subr.bf16.mxu1 %v1075_v1  ;;  %v1080_v6 = vld [vmem:[#allocation3 + $0x8] sm:$0xff]   ;;  %v1083_v9 = vld [vmem:[#allocation3 + $0xd0] sm:$0xff]  }
  0x5d   :  { %v1077_v3 = vld [vmem:[#allocation3 + $0x80] sm:$0xff]   ;;  %790 = vmatpush3.bf16.msra.mxu0 %v1076_v2  ;;  %v1081_v7 = vld [vmem:[#allocation3 + $0x88] sm:$0xff]   ;;  %v1084_v10 = vld [vmem:[#allocation3 + $0x10] sm:$0xff]  }
  0x5e   :  { %812 = vmatpush3.bf16.msra.mxu1 %v1077_v3  ;;  %791 = vmatprep.subr.bf16.mxu0 %v1078_v4  ;;  %v1085_v11 = vld [vmem:[#allocation3 + $0x90] sm:$0xff]   ;;  %v1086_v12 = vld [vmem:[#allocation3 + $0x58] sm:$0xff]   ;;  %v1090_v16 = vld [vmem:[#allocation3 + $0x60] sm:$0xff]  }
  0x5f   :  { %813 = vmatprep.subr.bf16.mxu1 %v1079_v5  ;;  %v1087_v13 = vld [vmem:[#allocation3 + $0xd8] sm:$0xff]   ;;  %v1091_v17 = vld [vmem:[#allocation3 + $0xe0] sm:$0xff]   ;;  %v1094_v20 = vld [vmem:[#allocation3 + $0x68] sm:$0xff]  }
  0x60   :  { %v1088_v14 = vld [vmem:[#allocation3 + $0x18] sm:$0xff]   ;;  %v1092_v18 = vld [vmem:[#allocation3 + $0x20] sm:$0xff]   ;;  %v1095_v21 = vld [vmem:[#allocation3 + $0xe8] sm:$0xff]  }
  0x61   :  { %792 = vmatpush3.bf16.msra.mxu0 %v1080_v6  ;;  %v1089_v15 = vld [vmem:[#allocation3 + $0x98] sm:$0xff]   ;;  %v1093_v19 = vld [vmem:[#allocation3 + $0xa0] sm:$0xff]   ;;  %v1096_v22 = vld [vmem:[#allocation3 + $0x28] sm:$0xff]  }
  0x62   :  { %814 = vmatpush3.bf16.msra.mxu1 %v1081_v7  ;;  %793 = vmatprep.subr.bf16.mxu0 %v1082_v8  ;;  %v1097_v23 = vld [vmem:[#allocation3 + $0xa8] sm:$0xff]   ;;  %v1098_v24 = vld [vmem:[#allocation3 + $0x70] sm:$0xff]   ;;  %v1102_v28 = vld [vmem:[#allocation3 + $0x78] sm:$0xff]  }
  0x63   :  { %815 = vmatprep.subr.bf16.mxu1 %v1083_v9  ;;  %v1099_v25 = vld [vmem:[#allocation3 + $0xf0] sm:$0xff]   ;;  %v1103_v29 = vld [vmem:[#allocation3 + $0xf8] sm:$0xff]   ;;  %v95_v32 = vld [vmem:[#allocation6] sm:$0xff] }
  0x64   :  { %v1100_v26 = vld [vmem:[#allocation3 + $0x30] sm:$0xff]   ;;  %v1104_v30 = vld [vmem:[#allocation3 + $0x38] sm:$0xff]   ;;  %v96_v33 = vld [vmem:[#allocation6 + $0x8] sm:$0xff]  ;;  %v751_v35 = vcombine.low %v95_v32, %v95_v32  ;;  %v752_v36 = vcombine.high %v95_v32, %v95_v32 }
  0x65   :  { %794 = vmatpush3.bf16.msra.mxu0 %v1084_v10  ;;  %v1101_v27 = vld [vmem:[#allocation3 + $0xb0] sm:$0xff]   ;;  %v1105_v31 = vld [vmem:[#allocation3 + $0xb8] sm:$0xff]   ;;  %v753_v37 = vcombine.low %v96_v33, %v96_v33  ;;  %v754_v38 = vcombine.high %v96_v33, %v96_v33  ;;  %v452_v45 = vld [vmem:[#allocation8 + $0x10] sm:$0xff] }
  0x66   :  { %816 = vmatpush3.bf16.msra.mxu1 %v1085_v11  ;;  %795 = vmatprep.subr.bf16.mxu0 %v1086_v12  ;;  %v450_v34 = vld [vmem:[#allocation8] sm:$0xff]  ;;  %v451_v39 = vld [vmem:[#allocation8 + $0x8] sm:$0xff]  ;;  %v453_v46 = vld [vmem:[#allocation8 + $0x18] sm:$0xff] }
  0x67   :  { %817 = vmatprep.subr.bf16.mxu1 %v1087_v13  ;;  %v466_v40 = vld [vmem:[#allocation9] sm:$0xff]  ;;  %v467_v41 = vld [vmem:[#allocation9 + $0x8] sm:$0xff]  ;;  %v1014_v43 = vpack.c.bf16 %v451_v39, %v450_v34  ;;  %v468_v47 = vld [vmem:[#allocation9 + $0x10] sm:$0xff]  ;;  %399 = vmatprep.mubr.bf16.mxu0 %v752_v36  ;;  %v1017_v49 = vpack.c.bf16 %v453_v46, %v452_v45 }
  0x68   :  { %v990_v44 = vpack.c.bf16 %v467_v41, %v466_v40  ;;  %439 = vmatprep.mubr.bf16.mxu1 %v754_v38  ;;  %v469_v48 = vld [vmem:[#allocation9 + $0x18] sm:$0xff]  ;;  %v454_v51 = vld [vmem:[#allocation8 + $0x20] sm:$0xff]  ;;  %v455_v52 = vld [vmem:[#allocation8 + $0x28] sm:$0xff] }
  0x69   :  { %796 = vmatpush3.bf16.msra.mxu0 %v1088_v14  ;;  %v993_v50 = vpack.c.bf16 %v469_v48, %v468_v47  ;;  %v470_v53 = vld [vmem:[#allocation9 + $0x20] sm:$0xff]  ;;  %v471_v54 = vld [vmem:[#allocation9 + $0x28] sm:$0xff]  ;;  %v1020_v55 = vpack.c.bf16 %v455_v52, %v454_v51  ;;  %v456_v57 = vld [vmem:[#allocation8 + $0x30] sm:$0xff] }
  0x6a   :  { %818 = vmatpush3.bf16.msra.mxu1 %v1089_v15  ;;  %797 = vmatprep.subr.bf16.mxu0 %v1090_v16  ;;  %v996_v56 = vpack.c.bf16 %v471_v54, %v470_v53  ;;  %v457_v58 = vld [vmem:[#allocation8 + $0x38] sm:$0xff]  ;;  %v472_v59 = vld [vmem:[#allocation9 + $0x30] sm:$0xff]  ;;  %v458_v63 = vld [vmem:[#allocation8 + $0x40] sm:$0xff] }
  0x6b   :  { %819 = vmatprep.subr.bf16.mxu1 %v1091_v17  ;;  %v473_v60 = vld [vmem:[#allocation9 + $0x38] sm:$0xff]  ;;  %v1023_v61 = vpack.c.bf16 %v457_v58, %v456_v57  ;;  %v459_v0 = vld [vmem:[#allocation8 + $0x48] sm:$0xff]  ;;  %v474_v1 = vld [vmem:[#allocation9 + $0x40] sm:$0xff] }
  0x6c   :  { %v999_v62 = vpack.c.bf16 %v473_v60, %v472_v59  ;;  %v475_v2 = vld [vmem:[#allocation9 + $0x48] sm:$0xff]  ;;  %v1026_v3 = vpack.c.bf16 %v459_v0, %v458_v63  ;;  %v460_v5 = vld [vmem:[#allocation8 + $0x50] sm:$0xff]  ;;  %v461_v6 = vld [vmem:[#allocation8 + $0x58] sm:$0xff] }
  0x6d   :  { %798 = vmatpush3.bf16.msra.mxu0 %v1092_v18  ;;  %v1002_v4 = vpack.c.bf16 %v475_v2, %v474_v1  ;;  %v476_v7 = vld [vmem:[#allocation9 + $0x50] sm:$0xff]  ;;  %v477_v8 = vld [vmem:[#allocation9 + $0x58] sm:$0xff]  ;;  %v1029_v9 = vpack.c.bf16 %v461_v6, %v460_v5  ;;  %v462_v11 = vld [vmem:[#allocation8 + $0x60] sm:$0xff] }
  0x6e   :  { %820 = vmatpush3.bf16.msra.mxu1 %v1093_v19  ;;  %799 = vmatprep.subr.bf16.mxu0 %v1094_v20  ;;  %v1005_v10 = vpack.c.bf16 %v477_v8, %v476_v7  ;;  %v463_v12 = vld [vmem:[#allocation8 + $0x68] sm:$0xff]  ;;  %v478_v14 = vld [vmem:[#allocation9 + $0x60] sm:$0xff]  ;;  %v464_v17 = vld [vmem:[#allocation8 + $0x70] sm:$0xff] }
  0x6f   :  { %821 = vmatprep.subr.bf16.mxu1 %v1095_v21  ;;  %v1032_v13 = vpack.c.bf16 %v463_v12, %v462_v11  ;;  %v479_v15 = vld [vmem:[#allocation9 + $0x68] sm:$0xff]  ;;  %v465_v18 = vld [vmem:[#allocation8 + $0x78] sm:$0xff]  ;;  %v480_v20 = vld [vmem:[#allocation9 + $0x70] sm:$0xff] }
  0x70   :  { %v1008_v16 = vpack.c.bf16 %v479_v15, %v478_v14  ;;  %v1035_v19 = vpack.c.bf16 %v465_v18, %v464_v17  ;;  %v481_v21 = vld [vmem:[#allocation9 + $0x78] sm:$0xff]  ;;  %v625_v32 = vld [vmem:[#allocation11] sm:$0xff]  ;;  %v626_v33 = vld [vmem:[#allocation11 + $0x8] sm:$0xff] }
  0x71   :  { %800 = vmatpush3.bf16.msra.mxu0 %v1096_v22  ;;  %v1011_v22 = vpack.c.bf16 %v481_v21, %v480_v20  ;;  %v627_v39 = vld [vmem:[#allocation11 + $0x10] sm:$0xff]  ;;  %v628_v40 = vld [vmem:[#allocation11 + $0x18] sm:$0xff] }
  0x72   :  { %822 = vmatpush3.bf16.msra.mxu1 %v1097_v23  ;;  %801 = vmatprep.subr.bf16.mxu0 %v1098_v24  ;;  %v1269_v23 = vmov 0.0   ;;  %v1041_v41 = vpack.c.bf16 %v628_v40, %v627_v39  ;;  %v631_v46 = vld [vmem:[#allocation11 + $0x30] sm:$0xff]  ;;  %v632_v47 = vld [vmem:[#allocation11 + $0x38] sm:$0xff] }
  0x73   :  { %823 = vmatprep.subr.bf16.mxu1 %v1099_v25  ;;  %v1047_v48 = vpack.c.bf16 %v632_v47, %v631_v46  ;;  %v635_v52 = vld [vmem:[#allocation11 + $0x50] sm:$0xff]  ;;  %v636_v53 = vld [vmem:[#allocation11 + $0x58] sm:$0xff] }
  0x74   :  { %v1053_v54 = vpack.c.bf16 %v636_v53, %v635_v52  ;;  %v639_v58 = vld [vmem:[#allocation11 + $0x70] sm:$0xff]  ;;  %v640_v59 = vld [vmem:[#allocation11 + $0x78] sm:$0xff] }
  0x75   :  { %802 = vmatpush3.bf16.msra.mxu0 %v1100_v26  ;;  %v1059_v60 = vpack.c.bf16 %v640_v59, %v639_v58  ;;  %v714_v6 = vld [vmem:[%s1430_s5] sm:$0x1] }
  0x76   :  { %824 = vmatpush3.bf16.msra.mxu1 %v1101_v27  ;;  %803 = vmatprep.subr.bf16.mxu0 %v1102_v28 }
  0x77   :  { %825 = vmatprep.subr.bf16.mxu1 %v1103_v29 }
  0x79   :  { %804 = vmatpush3.bf16.msra.mxu0 %v1104_v30 }
  0x7a   :  { %826 = vmatpush3.bf16.msra.mxu1 %v1105_v31  ;;  %989 = vmatprep.subr.bf16.mxu0 %v1267_v42 }
  0x7b   :  { %1013 = vmatprep.subr.bf16.mxu1 %v1267_v42 }
  0x7c   :  { %400 = vmatmul.mubr.bf16.vlgmr.msra.gmra.mrb[0].mxu0 %v751_v35 }
  0x7d   :  { %440 = vmatmul.mubr.bf16.vlgmr.msra.gmra.mrb[0].mxu1 %v753_v37  ;;  %991 = vmatpush3.bf16.msra.mxu0 %v990_v44  ;;  %v1038_v37 = vpack.c.bf16 %v626_v33, %v625_v32  ;;  %v630_v44 = vld [vmem:[#allocation11 + $0x28] sm:$0xff] }
  0x7e   :  { %1015 = vmatpush3.bf16.msra.mxu1 %v1014_v43  ;;  %992 = vmatprep.subr.bf16.mxu0 %v1267_v42  ;;  %v629_v43 = vld [vmem:[#allocation11 + $0x20] sm:$0xff] }
  0x7f   :  { %1016 = vmatprep.subr.bf16.mxu1 %v1267_v42  ;;  %951 = vmatprep.mubr.msk.f32.mxu1 %vm1268_vm0, %v1269_v23  ;;  %v1044_v45 = vpack.c.bf16 %v630_v44, %v629_v43 }
  0x80   :  { %916 = vmatprep.mubr.msk.f32.mxu0 %vm1268_vm0, %v1269_v23 }
  0x81   :  { %994 = vmatpush3.bf16.msra.mxu0 %v993_v50  ;;  %v634_v50 = vld [vmem:[#allocation11 + $0x48] sm:$0xff] }
  0x82   :  { %1018 = vmatpush3.bf16.msra.mxu1 %v1017_v49  ;;  %995 = vmatprep.subr.bf16.mxu0 %v1267_v42  ;;  %v633_v49 = vld [vmem:[#allocation11 + $0x40] sm:$0xff] }
  0x83   :  { %1019 = vmatprep.subr.bf16.mxu1 %v1267_v42  ;;  %v1050_v51 = vpack.c.bf16 %v634_v50, %v633_v49 }
  0x85   :  { %997 = vmatpush3.bf16.msra.mxu0 %v996_v56  ;;  %v638_v56 = vld [vmem:[#allocation11 + $0x68] sm:$0xff] }
  0x86   :  { %1021 = vmatpush3.bf16.msra.mxu1 %v1020_v55  ;;  %998 = vmatprep.subr.bf16.mxu0 %v1267_v42  ;;  %v637_v55 = vld [vmem:[#allocation11 + $0x60] sm:$0xff] }
  0x87   :  { %1022 = vmatprep.subr.bf16.mxu1 %v1267_v42  ;;  %v1056_v57 = vpack.c.bf16 %v638_v56, %v637_v55 }
  0x89   :  { %1000 = vmatpush3.bf16.msra.mxu0 %v999_v62 }
  0x8a   :  { %1024 = vmatpush3.bf16.msra.mxu1 %v1023_v61  ;;  %1001 = vmatprep.subr.bf16.mxu0 %v1267_v42 }
  0x8b   :  { %1025 = vmatprep.subr.bf16.mxu1 %v1267_v42 }
  0x8d   :  { %1003 = vmatpush3.bf16.msra.mxu0 %v1002_v4 }
  0x8e   :  { %1027 = vmatpush3.bf16.msra.mxu1 %v1026_v3  ;;  %1004 = vmatprep.subr.bf16.mxu0 %v1267_v42  ;;  %v448_v3 = vstv %s1431_s6  ;;  %s1270_s6 = smov [#allocation12]  }
  0x8f   :  { %1028 = vmatprep.subr.bf16.mxu1 %v1267_v42  ;;  %s740_s17 = sshll.u32 %s1270_s6, 4  ;;  %s741_s17 = int_to_ptr.vmem [resolvable:$true] %s740_s17 }
  0x90   :  { %s1228_s5 = scalar_lea.vmem %s741_s17, 32  ;;  %p1233_p13 = scmp.lt.s32.totalorder %s741_s17, %s741_s17 }
  0x91   :  { %1006 = vmatpush3.bf16.msra.mxu0 %v1005_v10  ;;  %p1229_p12 = scmp.ne.s32.totalorder %s741_s17, %s1228_s5  ;;  %p1234_p0 = scmp.lt.s32.totalorder %s1228_s5, %s1228_s5 }
  0x92   :  { %1030 = vmatpush3.bf16.msra.mxu1 %v1029_v9  ;;  %1007 = vmatprep.subr.bf16.mxu0 %v1267_v42 }
  0x93   :  { %1031 = vmatprep.subr.bf16.mxu1 %v1267_v42  ;;  %p1235_p1 = por %p1234_p0, %p1233_p13 }
  0x95   :  { %1009 = vmatpush3.bf16.msra.mxu0 %v1008_v16  ;;  %p1236_p2 = pnand %p1235_p1, %p1229_p12 }
  0x96   :  { %1033 = vmatpush3.bf16.msra.mxu1 %v1032_v13  ;;  %1010 = vmatprep.subr.bf16.mxu0 %v1267_v42 }
  0x97   :  { %1034 = vmatprep.subr.bf16.mxu1 %v1267_v42 }
  0x99   :  { %1012 = vmatpush3.bf16.msra.mxu0 %v1011_v22 }
  0x9a   :  { %1036 = vmatpush3.bf16.msra.mxu1 %v1035_v19  ;;  %1037 = vmatprep.subr.bf16.mxu0 %v1267_v42 }
 0x14f   :  { %v805_v24 = vpop.f32.mrb[0].mxu0 }
 0x150   :  { %v827_v25 = vpop.f32.mrb[0].mxu1  ;;  %v806_v26 = vpop.f32.mrb[1].mxu0 }
 0x151   :  { %v828_v27 = vpop.f32.mrb[1].mxu1  ;;  %v807_v28 = vadd.f32 %v806_v26, %v805_v24  ;;  %v808_v30 = vpop.f32.mrb[2].mxu0 }
 0x152   :  { %v829_v29 = vadd.f32 %v828_v27, %v827_v25  ;;  %v830_v31 = vpop.f32.mrb[2].mxu1  ;;  %v809_v34 = vpop.f32.mrb[3].mxu0 }
 0x153   :  { %v831_v35 = vpop.f32.mrb[3].mxu1 }
 0x154   :  { %v442_v36 = vadd.f32 %v829_v29, %v807_v28 }
 0x156   :  { %952 = vmatmul.mubr.f32.vlgmr.msra.gmra.mrb[4].mxu1 %v442_v36  ;;  %v483_v38 = vrot.slane %v442_v36, 1  ;;  %v641_v61 = vrot.slane %v442_v36, 2  ;;  %v449_v4 = vadd.f32 %v448_v3, %v442_v36 }
 0x158   :  { %917 = vmatmul.mubr.f32.vlgmr.msra.gmra.mrb[4].mxu0 %v483_v38  ;;  %v787_v7 = vmul.f32 -1.442695, %v449_v4 }
 0x159   :  { %1039 = vmatpush3.bf16.msra.mxu0 %v1038_v37  ;;  %986 = vmatprep.mubr.msk.f32.mxu0 %vm1268_vm0, %v1269_v23 }
 0x15a   :  { %1040 = vmatprep.subr.bf16.mxu0 %v1267_v42  ;;  %1110 = vpow2.f32 %v787_v7 }
 0x15d   :  { %1042 = vmatpush3.bf16.msra.mxu0 %v1041_v41 }
 0x15e   :  { %1043 = vmatprep.subr.bf16.mxu0 %v1267_v42 }
 0x161   :  { %1045 = vmatpush3.bf16.msra.mxu0 %v1044_v45 }
 0x162   :  { %1046 = vmatprep.subr.bf16.mxu0 %v1267_v42 }
 0x164   :  { %v1111_v11 = vpop.eup %1110 }
 0x165   :  { %1048 = vmatpush3.bf16.msra.mxu0 %v1047_v48  ;;  %v719_v13 = vadd.f32 1.0, %v1111_v11 }
 0x166   :  { %1049 = vmatprep.subr.bf16.mxu0 %v1267_v42 }
 0x169   :  { %1051 = vmatpush3.bf16.msra.mxu0 %v1050_v51 }
 0x16a   :  { %1052 = vmatprep.subr.bf16.mxu0 %v1267_v42 }
 0x16d   :  { %1054 = vmatpush3.bf16.msra.mxu0 %v1053_v54 }
 0x16e   :  { %1055 = vmatprep.subr.bf16.mxu0 %v1267_v42 }
 0x171   :  { %1057 = vmatpush3.bf16.msra.mxu0 %v1056_v57 }
 0x172   :  { %1058 = vmatprep.subr.bf16.mxu0 %v1267_v42 }
 0x175   :  { %1060 = vmatpush3.bf16.msra.mxu0 %v1059_v60 }
 0x178   :  { %987 = vmatmul.mubr.f32.vlgmr.msra.gmra.mrb[6].mxu0 %v641_v61 }
 0x229   :  { %v621_v62 = vpop.f32.mrb[4].mxu1 }
 0x22a   :  { %v953_v63 = vpop.f32.mrb[5].mxu1 }
 0x22b   :  { %v551_v0 = vpop.f32.mrb[4].mxu0 }
 0x22c   :  { %v622_v1 = vadd.f32 %v621_v62, %v551_v0  ;;  %v918_v2 = vpop.f32.mrb[5].mxu0 }
 0x24b   :  { %v709_v5 = vpop.f32.mrb[6].mxu0 }
 0x24c   :  { %v713_v42 = vadd.f32 %v709_v5, %v622_v1  ;;  %v988_v8 = vpop.f32.mrb[7].mxu0 }
 0x24e   :  { %v715_v9 = vadd.f32 %v714_v6, %v713_v42 }
 0x250   :  { %v788_v10 = vmul.f32 -1.442695, %v715_v9 }
 0x252   :  { %1112 = vpow2.f32 %v788_v10 }
 0x25c   :  { %v1113_v12 = vpop.eup %1112 }
 0x25d   :  { %v725_v14 = vadd.f32 1.0, %v1113_v12 }
 0x25f   :  { %1114 = vrcp.f32 %v725_v14 }
 0x260   :  { %1116 = vrcp.f32 %v719_v13 }
 0x269   :  { %v1115_v15 = vpop.eup %1114 }
 0x26a   :  { %v729_v16 = vrot.slane %v1115_v15, 7  ;;  %v1117_v17 = vpop.eup %1116 }
 0x26c   :  { %v732_v18 = vsel %vm731_vm1, %v1117_v17, %v729_v16 }
 0x26d   :  { %733 = vst [vmem:[#allocation12] sm:$0x3] %v732_v18 }
 0x26e   :  { %1239 = shalt.err (!%p1236_p2)
}
 0x26f   :  { %s1240_s20 = scalar_lea.hbm %s1432_s7, 32 }
 0x270   :  { %p1241_p3 = scmp.ne.s32.totalorder %s1432_s7, %s1240_s20  ;;  %p1244_p4 = scmp.lt.u32.totalorder %s1240_s20, %s1432_s7 }
 0x272   :  { %p1246_p5 = pnand %p1244_p4, %p1241_p3 }
 0x274   :  { %1249 = shalt.err (!%p1246_p5)
}
 0x275   :  { %743 = dma.vmem_to_hbm [thread:$0]  %s741_s17, 32, %s1432_s7, [#allocation5]  }
 0x276   :  { %1256 = dma.done.wait [#allocation5], 32  }
 0x277   :  { %1257 = vsyncadd [#allocation5], 4294967264 }
 0x278   :  { %747 = vsyncpa [#allocation4], 1 }
 0x279   :  { %748 = vsyncpa [#allocation7], 1 }
 0x27a   :  { %749 = vsyncpa [#allocation10], 1 }
 0x27b   :  { %750 = vsyncpa [#allocation5], 1 }

</bundles_post_ra>
